<compile_context>
chip_gen: v7x
topology: tpu7x:2x2x1
jax: 0.10.0
libtpu: 0.0.40
codegen_flags: <defaults>
</compile_context>

<pallas_src>
import functools
import math

import jax
import jax.numpy as jnp
from jax.experimental import pallas as pl
from jax.experimental.pallas import tpu as pltpu


def _round_up(a: int, b: int) -> int:
    return -(-a // b) * b


def _poly_kernel(x_ref, o_ref, t_ref, *, degree, feat):
    """One (row_tile, F) -> (row_tile, total) tile of the polynomial expansion.

    t_ref is a lane-0-aligned VMEM staging buffer (width >= F**(degree+1)).
    Terms whose output offset / stride are not 128-lane aligned are built there
    and moved into o_ref with a single bulk copy.
    """
    F = feat
    x = x_ref[...]                           # (TB, F) rows x features
    TB = x.shape[0]

    # term 0: x itself (only F lanes; narrow but unavoidable).
    o_ref[:, 0:F] = x

    if degree == 0:
        return

    # Hoist the per-column lane broadcasts once, at the widest width any degree
    # step needs (JAX does not CSE broadcast_in_dim).
    p_max = F ** degree
    if degree >= 2:
        xcols = [jnp.broadcast_to(x[:, j:j + 1], (TB, p_max)) for j in range(F)]
    else:
        xcols = [x[:, j:j + 1] for j in range(F)]

    # Static bookkeeping of where the current highest-degree term lives.
    prev_kind, prev_off = "x", 0
    off = F
    for k in range(1, degree + 1):
        P = F ** k                           # width of the previous term
        W = F * P                            # width of the new term
        # Direct stores into o_ref only when both stride and offset are
        # 128-lane aligned; otherwise stage in the aligned scratch.
        direct = (off % 128 == 0) and (P % 128 == 0)

        # Load the previous term once (aligned slice).  For the staged case the
        # load precedes this step's scratch overwrites, so aliasing is safe.
        if prev_kind == "x":
            p = x
        elif prev_kind == "t":
            p = t_ref[:, 0:P]
        else:                                # "o": previous step stored directly (aligned)
            p = o_ref[:, prev_off:prev_off + P]

        for j in range(F):
            col = xcols[j]
            if col.shape[-1] not in (1, P):
                col = col[:, 0:P]
            piece = col * p                  # new[:, j*P + i] = x[:, j] * p[:, i]
            if direct:
                o_ref[:, off + j * P: off + (j + 1) * P] = piece
            else:
                t_ref[:, j * P:(j + 1) * P] = piece

        if direct:
            prev_kind, prev_off = "o", off
        else:
            # One bulk aligned->unaligned copy (constant lane rotate + full-width
            # stores) instead of F narrow masked stores at misaligned offsets.
            o_ref[:, off: off + W] = t_ref[:, 0:W]
            prev_kind, prev_off = "t", 0
        off += W


def polynomial_features(x, degree, *, row_tile=None, vmem_budget_bytes=None):
    """Pallas TPU implementation of PolynomialFeatures(degree).forward(x)."""
    orig_shape = x.shape
    F = orig_shape[-1]
    rows = math.prod(orig_shape[:-1])
    total = sum(F ** k for k in range(1, degree + 2))
    top_w = F ** (degree + 1) if degree >= 1 else F
    scratch_w = _round_up(max(top_w, 128), 128)

    itemsize = jnp.dtype(x.dtype).itemsize
    sub = max(8, 32 // itemsize)             # sublane packing: 8 f32, 16 bf16, 32 int8

    # Generation-aware VMEM sizing: 128 MiB on v5e/v6e, 64 MiB on v7x.
    try:
        vmem_cap = int(pltpu.get_tpu_info().vmem_capacity_bytes)
        if vmem_cap <= 0:
            raise ValueError("bad vmem capacity")
    except Exception:
        vmem_cap = 64 << 20                  # conservative (v7x) fallback
    if vmem_budget_bytes is None:
        vmem_budget_bytes = int(0.70 * vmem_cap)

    # Per-row VMEM bytes: double-buffered output+input blocks, aligned staging
    # scratch, and the live working set (hoisted column broadcasts, previous
    # term, current product).
    p_max = F ** degree if degree >= 1 else 1
    work_w = (F * p_max if degree >= 2 else 0) + 2 * p_max + 2 * F
    per_row = itemsize * (2 * (total + F) + scratch_w + work_w)

    if row_tile is None:
        row_tile = (vmem_budget_bytes // max(per_row, 1)) // sub * sub
        row_tile = min(512, row_tile)
    row_tile = max(sub, (row_tile // sub) * sub)   # keep the (8,128) block rule happy
    rows_ceil = _round_up(rows, sub)
    if rows > sub:
        # Guarantee >= 2 row blocks so the "parallel" axis can use both of
        # v7x's TensorCores (costs one extra ~0.35us grid step elsewhere).
        row_tile = min(row_tile, _round_up(-(-rows // 2), sub))
    row_tile = min(row_tile, rows_ceil)

    # Actual VMEM this tiling needs; keep the compiler limit above it but never
    # above physical capacity.
    block_bytes = itemsize * row_tile * (2 * (total + F) + scratch_w + work_w)
    vmem_limit = min(vmem_cap, max(int(0.75 * vmem_cap), block_bytes + (4 << 20)))

    x2 = x.reshape(rows, F)                  # layout-preserving reshape -> free in XLA
    grid = (pl.cdiv(rows, row_tile),)        # ragged tail block handled by Pallas masking

    # TODO(synk): for very large F (>=32) with degree >= 2 on v7x (64 MiB VMEM), add a
    # second ("arbitrary") grid axis that column-blocks the top-degree term so row_tile
    # does not collapse toward 8 rows.
    # TODO(synk): on v5e with bfloat16 inputs, upcast to f32 at kernel entry (no bf16
    # VALU there) and cast only at the o_ref stores.
    out = pl.pallas_call(
        functools.partial(_poly_kernel, degree=degree, feat=F),
        out_shape=jax.ShapeDtypeStruct((rows, total), x.dtype),
        grid_spec=pltpu.PrefetchScalarGridSpec(
            num_scalar_prefetch=0,
            grid=grid,
            in_specs=[pl.BlockSpec((row_tile, F), lambda i: (i, 0))],
            out_specs=pl.BlockSpec((row_tile, total), lambda i: (i, 0)),
            scratch_shapes=[pltpu.VMEM((row_tile, scratch_w), x.dtype)],
        ),
        compiler_params=pltpu.CompilerParams(
            dimension_semantics=("parallel",),   # shards row grid across v7x's 2 TCs
            vmem_limit_bytes=int(vmem_limit),
        ),
        cost_estimate=pl.CostEstimate(
            flops=int(rows) * int(total - F),
            transcendentals=0,
            bytes_accessed=int(rows) * int(total + F) * int(itemsize),
        ),
    )(x2)
    return out.reshape(orig_shape[:-1] + (total,))


def _reference(x, degree):
    """Pure-JAX transliteration of the PyTorch forward (for verification)."""
    polys = [x]
    for _ in range(degree):
        p = jnp.einsum('...i,...j->...ij', polys[-1], x)
        polys.append(p.reshape(p.shape[:-2] + (-1,)))
    return jnp.concatenate(polys, axis=-1)


if __name__ == "__main__":
    degree = 2

    # x: (batch=2, seq=4, features=8) -> out: (2, 4, 8 + 64 + 512) = (2, 4, 584)
    x = jax.random.normal(jax.random.PRNGKey(0), (2, 4, 8), dtype=jnp.float32)
    out = jax.block_until_ready(polynomial_features(x, degree))
    ref = _reference(x, degree)
    assert out.shape == ref.shape, (out.shape, ref.shape)
    assert jnp.allclose(out, ref, rtol=1e-5, atol=1e-5), "mismatch vs reference"

    # Second check: ragged row count with a multi-block grid (exercises the
    # masked tail-block path and the staged aligned->unaligned bulk copies).
    x2 = jax.random.normal(jax.random.PRNGKey(1), (3, 50, 8), dtype=jnp.float32)
    out2 = jax.block_until_ready(polynomial_features(x2, degree, row_tile=64))
    ref2 = _reference(x2, degree)
    assert out2.shape == ref2.shape, (out2.shape, ref2.shape)
    assert jnp.allclose(out2, ref2, rtol=1e-5, atol=1e-5), "mismatch vs reference (ragged)"

    # Degree-1 sanity check (different code path: no pre-broadcast, small terms).
    x3 = jax.random.normal(jax.random.PRNGKey(2), (4, 16), dtype=jnp.float32)
    out3 = jax.block_until_ready(polynomial_features(x3, 1))
    ref3 = _reference(x3, 1)
    assert jnp.allclose(out3, ref3, rtol=1e-5, atol=1e-5), "mismatch vs reference (deg1)"

    print("KERNEL_OK")
</pallas_src>

<mosaic_0001>
module attributes {stable_mosaic.version = 11 : i64} {
  func.func @_poly_kernel(%arg0: i32, %arg1: memref<8x8xf32, #tpu.memory_space<vmem>>, %arg2: memref<8x584xf32, #tpu.memory_space<vmem>>, %arg3: memref<8x512xf32, #tpu.memory_space<vmem>>) attributes {dimension_semantics = [#tpu.dimension_semantics<parallel>], iteration_bounds = array<i64: 1>, scalar_prefetch = 0 : i64, scratch_operands = 1 : i64, tpu.core_type = #tpu.core_type<tc>, window_params = [{transform_indices = @transform_0, window_bounds = array<i64: 8, 8>}, {transform_indices = @transform_1, window_bounds = array<i64: 8, 584>}]} {
    %c0 = arith.constant 0 : index
    %c0_0 = arith.constant 0 : index
    %0 = vector.load %arg1[%c0, %c0_0] : memref<8x8xf32, #tpu.memory_space<vmem>>, vector<8x8xf32>
    %c0_1 = arith.constant 0 : index
    %c0_2 = arith.constant 0 : index
    %1 = vector.load %arg2[%c0_1, %c0_2] : memref<8x584xf32, #tpu.memory_space<vmem>>, vector<8x8xf32>
    tpu.vector_store %arg2[%c0_1, %c0_2], %0 {strides = array<i32>} : memref<8x584xf32, #tpu.memory_space<vmem>>, vector<8x8xf32>,
    %2 = vector.extract_strided_slice %0 {offsets = [0, 0], sizes = [8, 1], strides = [1, 1]} : vector<8x8xf32> to vector<8x1xf32>
    %3 = vector.shape_cast %2 : vector<8x1xf32> to vector<8x1xf32>
    %4 = vector.broadcast %3 : vector<8x1xf32> to vector<8x64xf32>
    %5 = vector.extract_strided_slice %0 {offsets = [0, 1], sizes = [8, 1], strides = [1, 1]} : vector<8x8xf32> to vector<8x1xf32>
    %6 = vector.shape_cast %5 : vector<8x1xf32> to vector<8x1xf32>
    %7 = vector.broadcast %6 : vector<8x1xf32> to vector<8x64xf32>
    %8 = vector.extract_strided_slice %0 {offsets = [0, 2], sizes = [8, 1], strides = [1, 1]} : vector<8x8xf32> to vector<8x1xf32>
    %9 = vector.shape_cast %8 : vector<8x1xf32> to vector<8x1xf32>
    %10 = vector.broadcast %9 : vector<8x1xf32> to vector<8x64xf32>
    %11 = vector.extract_strided_slice %0 {offsets = [0, 3], sizes = [8, 1], strides = [1, 1]} : vector<8x8xf32> to vector<8x1xf32>
    %12 = vector.shape_cast %11 : vector<8x1xf32> to vector<8x1xf32>
    %13 = vector.broadcast %12 : vector<8x1xf32> to vector<8x64xf32>
    %14 = vector.extract_strided_slice %0 {offsets = [0, 4], sizes = [8, 1], strides = [1, 1]} : vector<8x8xf32> to vector<8x1xf32>
    %15 = vector.shape_cast %14 : vector<8x1xf32> to vector<8x1xf32>
    %16 = vector.broadcast %15 : vector<8x1xf32> to vector<8x64xf32>
    %17 = vector.extract_strided_slice %0 {offsets = [0, 5], sizes = [8, 1], strides = [1, 1]} : vector<8x8xf32> to vector<8x1xf32>
    %18 = vector.shape_cast %17 : vector<8x1xf32> to vector<8x1xf32>
    %19 = vector.broadcast %18 : vector<8x1xf32> to vector<8x64xf32>
    %20 = vector.extract_strided_slice %0 {offsets = [0, 6], sizes = [8, 1], strides = [1, 1]} : vector<8x8xf32> to vector<8x1xf32>
    %21 = vector.shape_cast %20 : vector<8x1xf32> to vector<8x1xf32>
    %22 = vector.broadcast %21 : vector<8x1xf32> to vector<8x64xf32>
    %23 = vector.extract_strided_slice %0 {offsets = [0, 7], sizes = [8, 1], strides = [1, 1]} : vector<8x8xf32> to vector<8x1xf32>
    %24 = vector.shape_cast %23 : vector<8x1xf32> to vector<8x1xf32>
    %25 = vector.broadcast %24 : vector<8x1xf32> to vector<8x64xf32>
    %26 = vector.extract_strided_slice %4 {offsets = [0, 0], sizes = [8, 8], strides = [1, 1]} : vector<8x64xf32> to vector<8x8xf32>
    %27 = arith.mulf %26, %0 : vector<8x8xf32>
    %c0_3 = arith.constant 0 : index
    %c0_4 = arith.constant 0 : index
    %28 = vector.load %arg3[%c0_3, %c0_4] : memref<8x512xf32, #tpu.memory_space<vmem>>, vector<8x8xf32>
    tpu.vector_store %arg3[%c0_3, %c0_4], %27 {strides = array<i32>} : memref<8x512xf32, #tpu.memory_space<vmem>>, vector<8x8xf32>,
    %29 = vector.extract_strided_slice %7 {offsets = [0, 0], sizes = [8, 8], strides = [1, 1]} : vector<8x64xf32> to vector<8x8xf32>
    %30 = arith.mulf %29, %0 : vector<8x8xf32>
    %c0_5 = arith.constant 0 : index
    %c8 = arith.constant 8 : index
    %31 = vector.load %arg3[%c0_5, %c8] : memref<8x512xf32, #tpu.memory_space<vmem>>, vector<8x8xf32>
    tpu.vector_store %arg3[%c0_5, %c8], %30 {strides = array<i32>} : memref<8x512xf32, #tpu.memory_space<vmem>>, vector<8x8xf32>,
    %32 = vector.extract_strided_slice %10 {offsets = [0, 0], sizes = [8, 8], strides = [1, 1]} : vector<8x64xf32> to vector<8x8xf32>
    %33 = arith.mulf %32, %0 : vector<8x8xf32>
    %c0_6 = arith.constant 0 : index
    %c16 = arith.constant 16 : index
    %34 = vector.load %arg3[%c0_6, %c16] : memref<8x512xf32, #tpu.memory_space<vmem>>, vector<8x8xf32>
    tpu.vector_store %arg3[%c0_6, %c16], %33 {strides = array<i32>} : memref<8x512xf32, #tpu.memory_space<vmem>>, vector<8x8xf32>,
    %35 = vector.extract_strided_slice %13 {offsets = [0, 0], sizes = [8, 8], strides = [1, 1]} : vector<8x64xf32> to vector<8x8xf32>
    %36 = arith.mulf %35, %0 : vector<8x8xf32>
    %c0_7 = arith.constant 0 : index
    %c24 = arith.constant 24 : index
    %37 = vector.load %arg3[%c0_7, %c24] : memref<8x512xf32, #tpu.memory_space<vmem>>, vector<8x8xf32>
    tpu.vector_store %arg3[%c0_7, %c24], %36 {strides = array<i32>} : memref<8x512xf32, #tpu.memory_space<vmem>>, vector<8x8xf32>,
    %38 = vector.extract_strided_slice %16 {offsets = [0, 0], sizes = [8, 8], strides = [1, 1]} : vector<8x64xf32> to vector<8x8xf32>
    %39 = arith.mulf %38, %0 : vector<8x8xf32>
    %c0_8 = arith.constant 0 : index
    %c32 = arith.constant 32 : index
    %40 = vector.load %arg3[%c0_8, %c32] : memref<8x512xf32, #tpu.memory_space<vmem>>, vector<8x8xf32>
    tpu.vector_store %arg3[%c0_8, %c32], %39 {strides = array<i32>} : memref<8x512xf32, #tpu.memory_space<vmem>>, vector<8x8xf32>,
    %41 = vector.extract_strided_slice %19 {offsets = [0, 0], sizes = [8, 8], strides = [1, 1]} : vector<8x64xf32> to vector<8x8xf32>
    %42 = arith.mulf %41, %0 : vector<8x8xf32>
    %c0_9 = arith.constant 0 : index
    %c40 = arith.constant 40 : index
    %43 = vector.load %arg3[%c0_9, %c40] : memref<8x512xf32, #tpu.memory_space<vmem>>, vector<8x8xf32>
    tpu.vector_store %arg3[%c0_9, %c40], %42 {strides = array<i32>} : memref<8x512xf32, #tpu.memory_space<vmem>>, vector<8x8xf32>,
    %44 = vector.extract_strided_slice %22 {offsets = [0, 0], sizes = [8, 8], strides = [1, 1]} : vector<8x64xf32> to vector<8x8xf32>
    %45 = arith.mulf %44, %0 : vector<8x8xf32>
    %c0_10 = arith.constant 0 : index
    %c48 = arith.constant 48 : index
    %46 = vector.load %arg3[%c0_10, %c48] : memref<8x512xf32, #tpu.memory_space<vmem>>, vector<8x8xf32>
    tpu.vector_store %arg3[%c0_10, %c48], %45 {strides = array<i32>} : memref<8x512xf32, #tpu.memory_space<vmem>>, vector<8x8xf32>,
    %47 = vector.extract_strided_slice %25 {offsets = [0, 0], sizes = [8, 8], strides = [1, 1]} : vector<8x64xf32> to vector<8x8xf32>
    %48 = arith.mulf %47, %0 : vector<8x8xf32>
    %c0_11 = arith.constant 0 : index
    %c56 = arith.constant 56 : index
    %49 = vector.load %arg3[%c0_11, %c56] : memref<8x512xf32, #tpu.memory_space<vmem>>, vector<8x8xf32>
    tpu.vector_store %arg3[%c0_11, %c56], %48 {strides = array<i32>} : memref<8x512xf32, #tpu.memory_space<vmem>>, vector<8x8xf32>,
    %c0_12 = arith.constant 0 : index
    %c0_13 = arith.constant 0 : index
    %50 = vector.load %arg3[%c0_12, %c0_13] : memref<8x512xf32, #tpu.memory_space<vmem>>, vector<8x64xf32>
    %c0_14 = arith.constant 0 : index
    %c8_15 = arith.constant 8 : index
    %51 = vector.load %arg2[%c0_14, %c8_15] : memref<8x584xf32, #tpu.memory_space<vmem>>, vector<8x64xf32>
    tpu.vector_store %arg2[%c0_14, %c8_15], %50 {strides = array<i32>} : memref<8x584xf32, #tpu.memory_space<vmem>>, vector<8x64xf32>,
    %c0_16 = arith.constant 0 : index
    %c0_17 = arith.constant 0 : index
    %52 = vector.load %arg3[%c0_16, %c0_17] : memref<8x512xf32, #tpu.memory_space<vmem>>, vector<8x64xf32>
    %53 = arith.mulf %4, %52 : vector<8x64xf32>
    %c0_18 = arith.constant 0 : index
    %c0_19 = arith.constant 0 : index
    %54 = vector.load %arg3[%c0_18, %c0_19] : memref<8x512xf32, #tpu.memory_space<vmem>>, vector<8x64xf32>
    tpu.vector_store %arg3[%c0_18, %c0_19], %53 {strides = array<i32>} : memref<8x512xf32, #tpu.memory_space<vmem>>, vector<8x64xf32>,
    %55 = arith.mulf %7, %52 : vector<8x64xf32>
    %c0_20 = arith.constant 0 : index
    %c64 = arith.constant 64 : index
    %56 = vector.load %arg3[%c0_20, %c64] : memref<8x512xf32, #tpu.memory_space<vmem>>, vector<8x64xf32>
    tpu.vector_store %arg3[%c0_20, %c64], %55 {strides = array<i32>} : memref<8x512xf32, #tpu.memory_space<vmem>>, vector<8x64xf32>,
    %57 = arith.mulf %10, %52 : vector<8x64xf32>
    %c0_21 = arith.constant 0 : index
    %c128 = arith.constant 128 : index
    %58 = vector.load %arg3[%c0_21, %c128] : memref<8x512xf32, #tpu.memory_space<vmem>>, vector<8x64xf32>
    tpu.vector_store %arg3[%c0_21, %c128], %57 {strides = array<i32>} : memref<8x512xf32, #tpu.memory_space<vmem>>, vector<8x64xf32>,
    %59 = arith.mulf %13, %52 : vector<8x64xf32>
    %c0_22 = arith.constant 0 : index
    %c192 = arith.constant 192 : index
    %60 = vector.load %arg3[%c0_22, %c192] : memref<8x512xf32, #tpu.memory_space<vmem>>, vector<8x64xf32>
    tpu.vector_store %arg3[%c0_22, %c192], %59 {strides = array<i32>} : memref<8x512xf32, #tpu.memory_space<vmem>>, vector<8x64xf32>,
    %61 = arith.mulf %16, %52 : vector<8x64xf32>
    %c0_23 = arith.constant 0 : index
    %c256 = arith.constant 256 : index
    %62 = vector.load %arg3[%c0_23, %c256] : memref<8x512xf32, #tpu.memory_space<vmem>>, vector<8x64xf32>
    tpu.vector_store %arg3[%c0_23, %c256], %61 {strides = array<i32>} : memref<8x512xf32, #tpu.memory_space<vmem>>, vector<8x64xf32>,
    %63 = arith.mulf %19, %52 : vector<8x64xf32>
    %c0_24 = arith.constant 0 : index
    %c320 = arith.constant 320 : index
    %64 = vector.load %arg3[%c0_24, %c320] : memref<8x512xf32, #tpu.memory_space<vmem>>, vector<8x64xf32>
    tpu.vector_store %arg3[%c0_24, %c320], %63 {strides = array<i32>} : memref<8x512xf32, #tpu.memory_space<vmem>>, vector<8x64xf32>,
    %65 = arith.mulf %22, %52 : vector<8x64xf32>
    %c0_25 = arith.constant 0 : index
    %c384 = arith.constant 384 : index
    %66 = vector.load %arg3[%c0_25, %c384] : memref<8x512xf32, #tpu.memory_space<vmem>>, vector<8x64xf32>
    tpu.vector_store %arg3[%c0_25, %c384], %65 {strides = array<i32>} : memref<8x512xf32, #tpu.memory_space<vmem>>, vector<8x64xf32>,
    %67 = arith.mulf %25, %52 : vector<8x64xf32>
    %c0_26 = arith.constant 0 : index
    %c448 = arith.constant 448 : index
    %68 = vector.load %arg3[%c0_26, %c448] : memref<8x512xf32, #tpu.memory_space<vmem>>, vector<8x64xf32>
    tpu.vector_store %arg3[%c0_26, %c448], %67 {strides = array<i32>} : memref<8x512xf32, #tpu.memory_space<vmem>>, vector<8x64xf32>,
    %c0_27 = arith.constant 0 : index
    %c0_28 = arith.constant 0 : index
    %69 = vector.load %arg3[%c0_27, %c0_28] : memref<8x512xf32, #tpu.memory_space<vmem>>, vector<8x512xf32>
    %c0_29 = arith.constant 0 : index
    %c72 = arith.constant 72 : index
    %70 = vector.load %arg2[%c0_29, %c72] : memref<8x584xf32, #tpu.memory_space<vmem>>, vector<8x512xf32>
    tpu.vector_store %arg2[%c0_29, %c72], %69 {strides = array<i32>} : memref<8x584xf32, #tpu.memory_space<vmem>>, vector<8x512xf32>,
    return
  }
  func.func @transform_0(%arg0: i32) -> (i32, i32) {
    %c0_i32 = arith.constant 0 : i32
    %c0_i32_0 = arith.constant 0 : i32
    return %arg0, %c0_i32 : i32, i32
  }
  func.func @transform_1(%arg0: i32) -> (i32, i32) {
    %c0_i32 = arith.constant 0 : i32
    %c0_i32_0 = arith.constant 0 : i32
    return %arg0, %c0_i32 : i32, i32
  }
}

</mosaic_0001>

<bundles_post_ra>
// kernel: tpu_custom_call.1
= control target key start
LH: loop header
LB: loop body
LE: loop exit
PB: predicated region body
PF: predicated region fallthrough
CT: control target
= control target key end

     0   :  { %6 = vsyncpa [#allocation4], 0  ;;  %s329_s0 = inlined_call_operand.hbm [shape: f32[8,8], index: 0, kind: input, shape index: {}]   ;;  %s330_s1 = inlined_call_operand.hbm [shape: f32[8,584], index: 1, kind: output, shape index: {}]  }
   0x1   :  { %7 = vsyncpa [#allocation5], 0  ;;  %s272_s6 = smov [#allocation3]   ;;  %s224_s10 = scalar_lea.hbm %s329_s0, 128 }
   0x2   :  { %s14_s7 = sshll.u32 %s272_s6, 4  ;;  %p225_p0 = scmp.ne.s32.totalorder %s329_s0, %s224_s10  ;;  %s15_s7 = int_to_ptr.vmem [resolvable:$true] %s14_s7 }
   0x3   :  { %p228_p1 = scmp.lt.u32.totalorder %s224_s10, %s329_s0 }
   0x5   :  { %p230_p2 = pnand %p228_p1, %p225_p0 }
   0x7   :  { %233 = shalt.err (!%p230_p2)
}
   0x8   :  { %s234_s15 = scalar_lea.vmem %s15_s7, 128  ;;  %p239_p4 = scmp.lt.s32.totalorder %s15_s7, %s15_s7 }
   0x9   :  { %p235_p3 = scmp.ne.s32.totalorder %s15_s7, %s234_s15  ;;  %p240_p5 = scmp.lt.s32.totalorder %s234_s15, %s234_s15 }
   0xb   :  { %p241_p6 = por %p240_p5, %p239_p4 }
   0xd   :  { %p242_p7 = pnand %p241_p6, %p235_p3 }
   0xf   :  { %245 = shalt.err (!%p242_p7)
}
  0x10   :  { %17 = dma.hbm_to_vmem [thread:$0]  %s329_s0, 128, %s15_s7, [#allocation4]  }
  0x11   :  { %268 = dma.done.wait [#allocation4], 128  }
  0x12   :  { %269 = vsyncadd [#allocation4], 4294967168  ;;  %v273_v0 = vmov 3   ;;  %v274_v1 = vmov 1   ;;  %v21_v2 = vld [vmem:[#allocation3] sm:$0xff]  ;;  %v275_v3 = vmov 4  }
  0x13   :  { %217 = vset.pattern.permute.xlu1 %v273_v0  ;;  %215 = vset.pattern.permute.xlu0 %v274_v1  ;;  %v276_v4 = vmov 2   ;;  %v277_v5 = vmov 5   ;;  %v278_v6 = vmov 6   ;;  %v279_v7 = vmov 7   ;;  %s281_s0 = smov 8   ;;  %s282_s18 = smov 24  }
  0x14   :  { %38 = vperm.xlu1 %217, %v21_v2   ;;  %30 = vperm.xlu0 %215, %v21_v2   ;;  %vm22_vm0 = vcmask 64512   ;;  %v280_v8 = vmov 0   ;;  %s283_s19 = smov 16   ;;  %s284_s20 = smov 32   ;;  %vm64_vm1 = vcmask 130112   ;;  %vm71_vm2 = vcmask 195712  }
  0x15   :  { %23 = vst.msk [vmem:[#allocation6] sm:$0xff] %vm22_vm0, %v21_v2  ;;  %s285_s21 = smov 40   ;;  %s286_s22 = smov 48   ;;  %vm78_vm3 = vcmask 261312   ;;  %vm85_vm4 = vcmask 326912   ;;  %vm92_vm5 = vcmask 392512  }
  0x16   :  { %s287_s23 = smov 56   ;;  %vm99_vm6 = vcmask 458112   ;;  %vm106_vm7 = vcmask 523712   ;;  %vm117_vm8 = vcmask 523264   ;;  %s288_s24 = smov 64   ;;  %vm124_vm9 = vcmask 1048064  }
  0x17   :  { %vm113_vm10 = vcmask 588864   ;;  %s289_s25 = smov 72   ;;  %vm166_vm11 = vcmask 588800   ;;  %vm175_vm12 = vcmask 1048128   ;;  %s290_s26 = smov [#allocation6]  }
  0x18   :  { %218 = vset.pattern.permute.xlu1 %v275_v3  ;;  %216 = vset.pattern.permute.xlu0 %v276_v4  ;;  %s187_s27 = sshll.u32 %s290_s26, 4  ;;  %s188_s27 = int_to_ptr.vmem [resolvable:$true] %s187_s27 }
  0x19   :  { %42 = vperm.xlu1 %218, %v21_v2   ;;  %34 = vperm.xlu0 %216, %v21_v2   ;;  %s246_s28 = scalar_lea.vmem %s188_s27, 640  ;;  %p251_p9 = scmp.lt.s32.totalorder %s188_s27, %s188_s27 }
  0x1a   :  { %p247_p8 = scmp.ne.s32.totalorder %s188_s27, %s246_s28  ;;  %p252_p10 = scmp.lt.s32.totalorder %s246_s28, %s246_s28 }
  0x1c   :  { %p253_p11 = por %p252_p10, %p251_p9 }
  0x1d   :  { %219 = vset.pattern.permute.xlu1 %v277_v5  ;;  %220 = vset.pattern.permute.xlu0 %v278_v6 }
  0x1e   :  { %46 = vperm.xlu1 %219, %v21_v2   ;;  %50 = vperm.xlu0 %220, %v21_v2   ;;  %p254_p12 = pnand %p253_p11, %p247_p8 }
  0x22   :  { %221 = vset.pattern.permute.xlu1 %v279_v7  ;;  %223 = vset.pattern.permute.xlu0 %v279_v7 }
  0x23   :  { %54 = vperm.xlu1 %221, %v21_v2  }
  0x27   :  { %222 = vset.pattern.permute.xlu1 %v280_v8 }
  0x28   :  { %26 = vperm.xlu1 %222, %v21_v2  }
  0x93   :  { %v39_v9 = vpop.permute.xlu1 %38  ;;  %v31_v10 = vpop.permute.xlu0 %30 }
  0x94   :  { %v59_v11 = vmul.f32 %v31_v10, %v21_v2  ;;  %v73_v12 = vmul.f32 %v39_v9, %v21_v2 }
  0x96   :  { %61 = vrot.lane.b32.xlu0 %v59_v11, %s281_s0 }
  0x98   :  { %v43_v13 = vpop.permute.xlu1 %42  ;;  %v35_v14 = vpop.permute.xlu0 %34 }
  0x99   :  { %v66_v15 = vmul.f32 %v35_v14, %v21_v2  ;;  %v80_v16 = vmul.f32 %v43_v13, %v21_v2 }
  0x9a   :  { %75 = vrot.lane.b32.xlu0 %v73_v12, %s282_s18 }
  0x9b   :  { %68 = vrot.lane.b32.xlu1 %v66_v15, %s283_s19 }
  0x9d   :  { %v47_v17 = vpop.permute.xlu1 %46  ;;  %v51_v18 = vpop.permute.xlu0 %50 }
  0x9e   :  { %v87_v19 = vmul.f32 %v47_v17, %v21_v2  ;;  %v94_v20 = vmul.f32 %v51_v18, %v21_v2 }
  0x9f   :  { %82 = vrot.lane.b32.xlu1 %v80_v16, %s284_s20 }
  0xa0   :  { %89 = vrot.lane.b32.xlu0 %v87_v19, %s285_s21 }
  0xa2   :  { %v55_v21 = vpop.permute.xlu1 %54 }
  0xa3   :  { %v101_v22 = vmul.f32 %v55_v21, %v21_v2  ;;  %96 = vrot.lane.b32.xlu1 %v94_v20, %s286_s22 }
  0xa5   :  { %103 = vrot.lane.b32.xlu0 %v101_v22, %s287_s23 }
  0xa7   :  { %v27_v23 = vpop.permute.xlu1 %26 }
  0xa8   :  { %v57_v24 = vmul.f32 %v27_v23, %v21_v2 }
  0xaa   :  { %58 = vst.msk [vmem:[#allocation2] sm:$0xff] %vm22_vm0, %v57_v24 }
 0x108   :  { %v62_v25 = vpop.permute.xlu0 %61 }
 0x109   :  { %65 = vst.msk [vmem:[#allocation2] sm:$0xff] %vm64_vm1, %v62_v25 }
 0x10c   :  { %v76_v27 = vpop.permute.xlu0 %75 }
 0x10d   :  { %v69_v26 = vpop.permute.xlu1 %68 }
 0x10e   :  { %72 = vst.msk [vmem:[#allocation2] sm:$0xff] %vm71_vm2, %v69_v26 }
 0x10f   :  { %79 = vst.msk [vmem:[#allocation2] sm:$0xff] %vm78_vm3, %v76_v27 }
 0x111   :  { %v83_v28 = vpop.permute.xlu1 %82 }
 0x112   :  { %86 = vst.msk [vmem:[#allocation2] sm:$0xff] %vm85_vm4, %v83_v28  ;;  %v90_v29 = vpop.permute.xlu0 %89 }
 0x113   :  { %93 = vst.msk [vmem:[#allocation2] sm:$0xff] %vm92_vm5, %v90_v29 }
 0x115   :  { %v97_v30 = vpop.permute.xlu1 %96 }
 0x116   :  { %100 = vst.msk [vmem:[#allocation2] sm:$0xff] %vm99_vm6, %v97_v30 }
 0x117   :  { %v104_v31 = vpop.permute.xlu0 %103 }
 0x118   :  { %107 = vst.msk [vmem:[#allocation2] sm:$0xff] %vm106_vm7, %v104_v31 }
 0x11f   :  { %v115_v32 = vld [vmem:[#allocation2] sm:$0xff] }
 0x120   :  { %v128_v33 = vmul.f32 %v115_v32, %v39_v9  ;;  %v119_v34 = vmul.f32 %v115_v32, %v31_v10  ;;  %v126_v35 = vmul.f32 %v115_v32, %v35_v14  ;;  %v116_v36 = vmul.f32 %v115_v32, %v27_v23 }
 0x121   :  { %v142_v37 = vmul.f32 %v115_v32, %v51_v18  ;;  %v134_v38 = vmul.f32 %v115_v32, %v43_v13  ;;  %v144_v39 = vmul.f32 %v115_v32, %v55_v21  ;;  %v136_v40 = vmul.f32 %v115_v32, %v47_v17 }
 0x122   :  { %130 = vrot.lane.b32.xlu0 %v128_v33, %s288_s24  ;;  %121 = vrot.lane.b32.xlu1 %v119_v34, %s288_s24  ;;  %127 = vst.msk [vmem:[#allocation2 + $0x8] sm:$0xff] %vm117_vm8, %v126_v35  ;;  %118 = vst.msk [vmem:[#allocation2] sm:$0xff] %vm117_vm8, %v116_v36 }
 0x123   :  { %143 = vst.msk [vmem:[#allocation2 + $0x18] sm:$0xff] %vm117_vm8, %v142_v37  ;;  %135 = vst.msk [vmem:[#allocation2 + $0x10] sm:$0xff] %vm117_vm8, %v134_v38 }
 0x126   :  { %146 = vrot.lane.b32.xlu0 %v144_v39, %s288_s24  ;;  %138 = vrot.lane.b32.xlu1 %v136_v40, %s288_s24 }
 0x12a   :  { %110 = vrot.lane.b32.xlu1 %v115_v32, %s281_s0 }
 0x194   :  { %v131_v41 = vpop.permute.xlu0 %130  ;;  %v122_v42 = vpop.permute.xlu1 %121 }
 0x195   :  { %133 = vst.msk [vmem:[#allocation2 + $0x8] sm:$0xff] %vm124_vm9, %v131_v41  ;;  %125 = vst.msk [vmem:[#allocation2] sm:$0xff] %vm124_vm9, %v122_v42 }
 0x198   :  { %v147_v43 = vpop.permute.xlu0 %146  ;;  %v139_v44 = vpop.permute.xlu1 %138 }
 0x199   :  { %149 = vst.msk [vmem:[#allocation2 + $0x18] sm:$0xff] %vm124_vm9, %v147_v43  ;;  %141 = vst.msk [vmem:[#allocation2 + $0x10] sm:$0xff] %vm124_vm9, %v139_v44 }
 0x19c   :  { %v111_v45 = vpop.permute.xlu1 %110  ;;  %v151_v46 = vld [vmem:[#allocation2 + $0x8] sm:$0xff]  ;;  %v150_v47 = vld [vmem:[#allocation2] sm:$0xff] }
 0x19d   :  { %114 = vst.msk [vmem:[#allocation6] sm:$0xff] %vm113_vm10, %v111_v45  ;;  %160 = vrot.lane.b32.xlu1 %v151_v46, %s289_s25  ;;  %158 = vrot.lane.b32.xlu0 %v150_v47, %s289_s25 }
 0x1a0   :  { %v153_v48 = vld [vmem:[#allocation2 + $0x18] sm:$0xff]  ;;  %v152_v49 = vld [vmem:[#allocation2 + $0x10] sm:$0xff] }
 0x1a1   :  { %164 = vrot.lane.b32.xlu1 %v153_v48, %s289_s25  ;;  %162 = vrot.lane.b32.xlu0 %v152_v49, %s289_s25 }
 0x20f   :  { %v161_v50 = vpop.permute.xlu1 %160  ;;  %v159_v51 = vpop.permute.xlu0 %158 }
 0x210   :  { %v167_v52 = vsel %vm166_vm11, %v159_v51, %v161_v50  ;;  %176 = vst.msk [vmem:[#allocation6] sm:$0xff] %vm175_vm12, %v159_v51 }
 0x211   :  { %177 = vst [vmem:[#allocation6 + $0x8] sm:$0xff] %v167_v52 }
 0x213   :  { %v165_v53 = vpop.permute.xlu1 %164  ;;  %v163_v54 = vpop.permute.xlu0 %162 }
 0x214   :  { %180 = vst.msk [vmem:[#allocation6 + $0x20] sm:$0xff] %vm166_vm11, %v165_v53  ;;  %v168_v55 = vsel %vm166_vm11, %v161_v50, %v163_v54  ;;  %v169_v56 = vsel %vm166_vm11, %v163_v54, %v165_v53 }
 0x215   :  { %178 = vst [vmem:[#allocation6 + $0x10] sm:$0xff] %v168_v55  ;;  %179 = vst [vmem:[#allocation6 + $0x18] sm:$0xff] %v169_v56 }
 0x216   :  { %257 = shalt.err (!%p254_p12)
}
 0x217   :  { %s258_s2 = scalar_lea.hbm %s330_s1, 640 }
 0x218   :  { %p259_p13 = scmp.ne.s32.totalorder %s330_s1, %s258_s2  ;;  %p262_p0 = scmp.lt.u32.totalorder %s258_s2, %s330_s1 }
 0x21a   :  { %p264_p1 = pnand %p262_p0, %p259_p13 }
 0x21c   :  { %267 = shalt.err (!%p264_p1)
}
 0x21d   :  { %190 = dma.vmem_to_hbm [thread:$0]  %s188_s27, 640, %s330_s1, [#allocation5]  }
 0x21e   :  { %270 = dma.done.wait [#allocation5], 640  }
 0x21f   :  { %271 = vsyncadd [#allocation5], 4294966656 }
 0x220   :  { %194 = vsyncpa [#allocation4], 1 }
 0x221   :  { %195 = vsyncpa [#allocation5], 1 }

</bundles_post_ra>
